<compile_context>
chip_gen: v7x
topology: tpu7x:2x2x1
jax: 0.10.0
libtpu: 0.0.40
codegen_flags: <defaults>
</compile_context>

<pallas_src>
import functools

import jax
import jax.numpy as jnp
from jax.experimental import pallas as pl
from jax.experimental.pallas import tpu as pltpu


def _round_up(x: int, m: int) -> int:
    return ((x + m - 1) // m) * m


def _vmem_budget_bytes() -> int:
    """Generation-aware VMEM budget with headroom for Mosaic scratch."""
    try:
        cap = int(pltpu.get_tpu_info().vmem_capacity_bytes)
    except Exception:
        cap = 64 * 1024 * 1024  # conservative fallback (v7x per-core VMEM)
    # Leave ~25% headroom for internal scratch / pipeline bookkeeping.
    return max((cap * 3) // 4, 16 * 1024 * 1024)


# ---------------------------------------------------------------------------
# Kernels
# ---------------------------------------------------------------------------

def ffn_kernel_single(x_ref, w1_ref, b1_ref, w2_ref, b2_ref, o_ref):
    """Resident-weight path: full hidden dim in one step, no scratch."""
    # x_ref: (tm, Dp), w1_ref: (Dp, Hp), b1_ref: (1, Hp),
    # w2_ref: (Hp, Dp), b2_ref: (1, Dp), o_ref: (tm, Dp)
    h = jnp.dot(x_ref[...], w1_ref[...], preferred_element_type=jnp.float32)
    h = jnp.maximum(h + b1_ref[...], 0.0)           # fc1 bias + ReLU (f32)
    # dropout: identity (eval mode)
    acc = jnp.dot(h.astype(w2_ref.dtype), w2_ref[...],
                  preferred_element_type=jnp.float32)
    o_ref[...] = (acc + b2_ref[...]).astype(o_ref.dtype)


def ffn_kernel_multi(x_ref, w1_ref, b1_ref, w2_ref, b2_ref, o_ref, acc_ref):
    """Hidden-tiled path: f32 accumulator resident across the hidden axis."""
    h_idx = pl.program_id(1)

    @pl.when(h_idx == 0)
    def _init():
        acc_ref[...] = jnp.zeros_like(acc_ref)

    # fc1 partial over this hidden slice (MXU, f32 accumulation).
    h = jnp.dot(x_ref[...], w1_ref[...], preferred_element_type=jnp.float32)
    h = jnp.maximum(h + b1_ref[...], 0.0)           # ReLU is per hidden column
    # dropout: identity (eval mode)

    # fc2 partial-sum into the f32 accumulator.
    acc_ref[...] += jnp.dot(h.astype(w2_ref.dtype), w2_ref[...],
                            preferred_element_type=jnp.float32)

    @pl.when(h_idx == pl.num_programs(1) - 1)
    def _finalize():
        o_ref[...] = (acc_ref[...] + b2_ref[...]).astype(o_ref.dtype)


# ---------------------------------------------------------------------------
# Tile selection
# ---------------------------------------------------------------------------

def _select_tiles(M, D_pad, H_pad, cbytes, obytes, block_rows, budget):
    """Pick (tm, th): biggest MXU-aligned row tile, resident weights if they
    fit, shrinking the hidden tile before the row tile when VMEM-tight."""
    # Row-tile candidates: multiples of 256, largest first.
    tm_max = max(256, min(_round_up(block_rows, 256), _round_up(M, 256)))
    tm_cands = []
    t = tm_max
    while t >= 256:
        tm_cands.append(t)
        t //= 2

    # Hidden-tile candidates: resident (H_pad) first, then halves (still
    # multiples of 128 and exact divisors of H_pad).
    th_cands = [H_pad]
    t = H_pad
    while t % 256 == 0 and t // 2 >= 128:
        t //= 2
        th_cands.append(t)

    def footprint(tm, th):
        multi = th < H_pad
        fp = (2 * tm * D_pad * cbytes          # x tiles (double-buffered)
              + 2 * D_pad * th * cbytes        # W1 tiles
              + 2 * th * D_pad * cbytes        # W2 tiles
              + 2 * th * 4 + 2 * D_pad * 4     # biases (f32)
              + 2 * tm * D_pad * obytes        # output tiles
              + tm * th * (4 + cbytes))        # fc1 intermediate (f32 + cast)
        if multi:
            fp += tm * D_pad * 4               # f32 accumulator scratch
        return fp

    for tm in tm_cands:                        # shrink tm last
        for th in th_cands:                    # shrink th first
            if footprint(tm, th) <= budget:
                return tm, th
    return tm_cands[-1], th_cands[-1]          # fallback: smallest tiles


# ---------------------------------------------------------------------------
# Parameter preparation (once, outside the per-call hot path)
# ---------------------------------------------------------------------------

def prepare_ffn_params(w1, b1, w2, b2, compute_dtype=None):
    """Pad d_model/hidden_dim to lane-dense multiples of 128 and cast to the
    compute dtype.  Zero padding is mathematically exact for Linear + ReLU."""
    D, H = w1.shape
    cdtype = w1.dtype if compute_dtype is None else compute_dtype
    D_pad = _round_up(D, 128)
    H_pad = _round_up(H, 128)
    if (D_pad, H_pad) != (D, H):
        w1 = jnp.pad(w1, ((0, D_pad - D), (0, H_pad - H)))
        w2 = jnp.pad(w2, ((0, H_pad - H), (0, D_pad - D)))
        b1 = jnp.pad(b1, ((0, H_pad - H),))
        b2 = jnp.pad(b2, ((0, D_pad - D),))
    w1p = w1.astype(cdtype)
    w2p = w2.astype(cdtype)
    b1p = b1.reshape(1, H_pad).astype(jnp.float32)
    b2p = b2.reshape(1, D_pad).astype(jnp.float32)
    return w1p, b1p, w2p, b2p


# ---------------------------------------------------------------------------
# Forward
# ---------------------------------------------------------------------------

@functools.partial(jax.jit, static_argnames=("block_rows",))
def feed_forward(x, w1p, b1p, w2p, b2p, *, block_rows=768):
    """x: [B, S, D]; padded params from prepare_ffn_params()."""
    B, S, D = x.shape
    D_pad, H_pad = w1p.shape
    M = B * S
    out_dtype = x.dtype
    cdtype = w1p.dtype
    cbytes = jnp.dtype(cdtype).itemsize
    obytes = jnp.dtype(out_dtype).itemsize

    budget = _vmem_budget_bytes()
    tm, th = _select_tiles(M, D_pad, H_pad, cbytes, obytes, block_rows, budget)
    M_pad = _round_up(M, tm)

    xf = x.reshape(M, D)
    if (M_pad, D_pad) != (M, D):
        xf = jnp.pad(xf, ((0, M_pad - M), (0, D_pad - D)))
    xf = xf.astype(cdtype)

    n_row_tiles = M_pad // tm
    n_h_tiles = H_pad // th
    resident = n_h_tiles == 1

    # Advisory cost estimate (ints; real weight traffic per row tile).
    w_passes = 1 if resident else n_row_tiles
    cost = pl.CostEstimate(
        flops=int(4 * M_pad * D_pad * H_pad),
        transcendentals=0,
        bytes_accessed=int(M_pad * D_pad * (cbytes + obytes)
                           + w_passes * 2 * D_pad * H_pad * cbytes
                           + H_pad * 4 + D_pad * 4),
    )

    if resident:
        # Weight block index is constant over the grid -> W1/W2 DMA'd once.
        grid_spec = pltpu.PrefetchScalarGridSpec(
            num_scalar_prefetch=0,
            grid=(n_row_tiles,),
            in_specs=[
                pl.BlockSpec((tm, D_pad), lambda i: (i, 0)),      # x rows
                pl.BlockSpec((D_pad, H_pad), lambda i: (0, 0)),   # W1 (resident)
                pl.BlockSpec((1, H_pad), lambda i: (0, 0)),       # b1
                pl.BlockSpec((H_pad, D_pad), lambda i: (0, 0)),   # W2 (resident)
                pl.BlockSpec((1, D_pad), lambda i: (0, 0)),       # b2
            ],
            out_specs=pl.BlockSpec((tm, D_pad), lambda i: (i, 0)),
            scratch_shapes=[],
        )
        kernel = ffn_kernel_single
        dims = ("parallel",)
    else:
        grid_spec = pltpu.PrefetchScalarGridSpec(
            num_scalar_prefetch=0,
            grid=(n_row_tiles, n_h_tiles),
            in_specs=[
                pl.BlockSpec((tm, D_pad), lambda i, h: (i, 0)),   # x rows
                pl.BlockSpec((D_pad, th), lambda i, h: (0, h)),   # W1 slice
                pl.BlockSpec((1, th), lambda i, h: (0, h)),       # b1 slice
                pl.BlockSpec((th, D_pad), lambda i, h: (h, 0)),   # W2 slice
                pl.BlockSpec((1, D_pad), lambda i, h: (0, 0)),    # b2
            ],
            out_specs=pl.BlockSpec((tm, D_pad), lambda i, h: (i, 0)),
            scratch_shapes=[pltpu.VMEM((tm, D_pad), jnp.float32)],
        )
        kernel = ffn_kernel_multi
        dims = ("parallel", "arbitrary")

    out = pl.pallas_call(
        kernel,
        out_shape=jax.ShapeDtypeStruct((M_pad, D_pad), out_dtype),
        grid_spec=grid_spec,
        compiler_params=pltpu.CompilerParams(
            dimension_semantics=dims,
            vmem_limit_bytes=int(budget),
        ),
        cost_estimate=cost,
    )(xf, w1p, b1p, w2p, b2p)

    return out[:M, :D].reshape(B, S, D)


if __name__ == "__main__":
    # Small shapes consistent with the module's forward: [B, S, d_model]
    B, S, d_model, hidden_dim = 2, 8, 32, 64

    key = jax.random.PRNGKey(0)
    kx, kw1, kb1, kw2, kb2 = jax.random.split(key, 5)

    x = jax.random.normal(kx, (B, S, d_model), dtype=jnp.float32)
    # Deterministic synthetic parameters (not a checkpoint load).
    w1 = jax.random.normal(kw1, (d_model, hidden_dim), dtype=jnp.float32) * 0.02
    b1 = jax.random.normal(kb1, (hidden_dim,), dtype=jnp.float32) * 0.02
    w2 = jax.random.normal(kw2, (hidden_dim, d_model), dtype=jnp.float32) * 0.02
    b2 = jax.random.normal(kb2, (d_model,), dtype=jnp.float32) * 0.02

    ref = jnp.maximum(x @ w1 + b1, 0.0) @ w2 + b2

    # f32 compute path (tight tolerance).
    params_f32 = prepare_ffn_params(w1, b1, w2, b2)
    out = feed_forward(x, *params_f32)
    jax.block_until_ready(out)
    assert out.shape == (B, S, d_model)
    assert jnp.allclose(out, ref, atol=1e-5, rtol=1e-5)

    # bf16 matmul path with f32 accumulation (recommended on v5e/v6e/v7x).
    params_bf16 = prepare_ffn_params(w1, b1, w2, b2, compute_dtype=jnp.bfloat16)
    out_bf16 = feed_forward(x, *params_bf16)
    jax.block_until_ready(out_bf16)
    assert out_bf16.shape == (B, S, d_model)
    assert jnp.allclose(out_bf16, ref, atol=1e-2, rtol=5e-2)

    print("KERNEL_OK")
</pallas_src>

<mosaic_0001>
module attributes {stable_mosaic.version = 11 : i64} {
  func.func @ffn_kernel_single(%arg0: i32, %arg1: memref<256x128xf32, #tpu.memory_space<vmem>>, %arg2: memref<128x128xf32, #tpu.memory_space<vmem>>, %arg3: memref<1x128xf32, #tpu.memory_space<vmem>>, %arg4: memref<128x128xf32, #tpu.memory_space<vmem>>, %arg5: memref<1x128xf32, #tpu.memory_space<vmem>>, %arg6: memref<256x128xf32, #tpu.memory_space<vmem>>) attributes {dimension_semantics = [#tpu.dimension_semantics<parallel>], iteration_bounds = array<i64: 1>, scalar_prefetch = 0 : i64, scratch_operands = 0 : i64, tpu.core_type = #tpu.core_type<tc>, window_params = [{transform_indices = @transform_0, window_bounds = array<i64: 256, 128>}, {pipeline_mode = #tpu.pipeline_mode<synchronous>, transform_indices = @transform_1, window_bounds = array<i64: 128, 128>}, {pipeline_mode = #tpu.pipeline_mode<synchronous>, transform_indices = @transform_2, window_bounds = array<i64: 1, 128>}, {pipeline_mode = #tpu.pipeline_mode<synchronous>, transform_indices = @transform_3, window_bounds = array<i64: 128, 128>}, {pipeline_mode = #tpu.pipeline_mode<synchronous>, transform_indices = @transform_4, window_bounds = array<i64: 1, 128>}, {transform_indices = @transform_5, window_bounds = array<i64: 256, 128>}]} {
    %c0 = arith.constant 0 : index
    %c0_0 = arith.constant 0 : index
    %0 = vector.load %arg1[%c0, %c0_0] : memref<256x128xf32, #tpu.memory_space<vmem>>, vector<256x128xf32>
    %c0_1 = arith.constant 0 : index
    %c0_2 = arith.constant 0 : index
    %1 = vector.load %arg2[%c0_1, %c0_2] : memref<128x128xf32, #tpu.memory_space<vmem>>, vector<128x128xf32>
    %cst = arith.constant dense<0.000000e+00> : vector<256x128xf32>
    %2 = tpu.matmul %0, %1, %cst {dimension_numbers = #tpu.dot_dimension_numbers<[1], [0], [0], [1], [0, 0, 1, 1], [], []>} : vector<256x128xf32>, vector<128x128xf32>, vector<256x128xf32> -> vector<256x128xf32>
    %c0_3 = arith.constant 0 : index
    %c0_4 = arith.constant 0 : index
    %3 = vector.load %arg3[%c0_3, %c0_4] : memref<1x128xf32, #tpu.memory_space<vmem>>, vector<1x128xf32>
    %4 = vector.broadcast %3 : vector<1x128xf32> to vector<256x128xf32>
    %5 = arith.addf %2, %4 : vector<256x128xf32>
    %cst_5 = arith.constant 0.000000e+00 : f32
    %6 = vector.broadcast %cst_5 : f32 to vector<256x128xf32>
    %7 = arith.maximumf %5, %6 : vector<256x128xf32>
    %c0_6 = arith.constant 0 : index
    %c0_7 = arith.constant 0 : index
    %8 = vector.load %arg4[%c0_6, %c0_7] : memref<128x128xf32, #tpu.memory_space<vmem>>, vector<128x128xf32>
    %cst_8 = arith.constant dense<0.000000e+00> : vector<256x128xf32>
    %9 = tpu.matmul %7, %8, %cst_8 {dimension_numbers = #tpu.dot_dimension_numbers<[1], [0], [0], [1], [0, 0, 1, 1], [], []>} : vector<256x128xf32>, vector<128x128xf32>, vector<256x128xf32> -> vector<256x128xf32>
    %c0_9 = arith.constant 0 : index
    %c0_10 = arith.constant 0 : index
    %10 = vector.load %arg5[%c0_9, %c0_10] : memref<1x128xf32, #tpu.memory_space<vmem>>, vector<1x128xf32>
    %11 = vector.broadcast %10 : vector<1x128xf32> to vector<256x128xf32>
    %12 = arith.addf %9, %11 : vector<256x128xf32>
    %c0_11 = arith.constant 0 : index
    %c0_12 = arith.constant 0 : index
    %13 = vector.load %arg6[%c0_11, %c0_12] : memref<256x128xf32, #tpu.memory_space<vmem>>, vector<256x128xf32>
    tpu.vector_store %arg6[%c0_11, %c0_12], %12 {strides = array<i32>} : memref<256x128xf32, #tpu.memory_space<vmem>>, vector<256x128xf32>,
    return
  }
  func.func @transform_0(%arg0: i32) -> (i32, i32) {
    %c0_i32 = arith.constant 0 : i32
    %c0_i32_0 = arith.constant 0 : i32
    return %arg0, %c0_i32 : i32, i32
  }
  func.func @transform_1(%arg0: i32) -> (i32, i32) {
    %c0_i32 = arith.constant 0 : i32
    %c0_i32_0 = arith.constant 0 : i32
    %c0_i32_1 = arith.constant 0 : i32
    return %c0_i32, %c0_i32_0 : i32, i32
  }
  func.func @transform_2(%arg0: i32) -> (i32, i32) {
    %c0_i32 = arith.constant 0 : i32
    %c0_i32_0 = arith.constant 0 : i32
    %c0_i32_1 = arith.constant 0 : i32
    return %c0_i32, %c0_i32_0 : i32, i32
  }
  func.func @transform_3(%arg0: i32) -> (i32, i32) {
    %c0_i32 = arith.constant 0 : i32
    %c0_i32_0 = arith.constant 0 : i32
    %c0_i32_1 = arith.constant 0 : i32
    return %c0_i32, %c0_i32_0 : i32, i32
  }
  func.func @transform_4(%arg0: i32) -> (i32, i32) {
    %c0_i32 = arith.constant 0 : i32
    %c0_i32_0 = arith.constant 0 : i32
    %c0_i32_1 = arith.constant 0 : i32
    return %c0_i32, %c0_i32_0 : i32, i32
  }
  func.func @transform_5(%arg0: i32) -> (i32, i32) {
    %c0_i32 = arith.constant 0 : i32
    %c0_i32_0 = arith.constant 0 : i32
    return %arg0, %c0_i32 : i32, i32
  }
}

</mosaic_0001>

<bundles_post_ra>
// kernel: feed_forward.1
= control target key start
LH: loop header
LB: loop body
LE: loop exit
PB: predicated region body
PF: predicated region fallthrough
CT: control target
= control target key end

     0   :  { %s1330_s1 = inlined_call_operand.vmem [shape: f32[128,128], index: 1, kind: input, shape index: {}]   ;;  %s1331_s0 = inlined_call_operand.vmem [shape: f32[256,128], index: 0, kind: input, shape index: {}]   ;;  %s1332_s3 = inlined_call_operand.vmem [shape: f32[128,128], index: 3, kind: input, shape index: {}]   ;;  %s1333_s2 = inlined_call_operand.vmem [shape: f32[1,128], index: 2, kind: input, shape index: {}]   ;;  %s1334_s4 = inlined_call_operand.vmem [shape: f32[1,128], index: 4, kind: input, shape index: {}]   ;;  %s1335_s5 = inlined_call_operand.vmem [shape: f32[256,128], index: 5, kind: output, shape index: {}]  }
   0x1   :  { %v52_v0 = vld [vmem:[%s1330_s1] sm:$0xff]  ;;  %v53_v1 = vld [vmem:[%s1330_s1 + $0x8] sm:$0xff]  ;;  %v54_v2 = vld [vmem:[%s1330_s1 + $0x10] sm:$0xff] }
   0x2   :  { %v874_v3 = vpack.c.bf16 %v53_v1, %v52_v0  ;;  %v55_v4 = vld [vmem:[%s1330_s1 + $0x18] sm:$0xff]  ;;  %v56_v6 = vld [vmem:[%s1330_s1 + $0x20] sm:$0xff]  ;;  %v57_v7 = vld [vmem:[%s1330_s1 + $0x28] sm:$0xff] }
   0x3   :  { %v878_v5 = vpack.c.bf16 %v55_v4, %v54_v2  ;;  %v882_v8 = vpack.c.bf16 %v57_v7, %v56_v6  ;;  %v20_v9 = vld [vmem:[%s1331_s0] sm:$0xff]  ;;  %v58_v10 = vld [vmem:[%s1330_s1 + $0x30] sm:$0xff]  ;;  %v59_v11 = vld [vmem:[%s1330_s1 + $0x38] sm:$0xff] }
   0x4   :  { %875 = vmatprep.subr.bf16.mxu0 %v874_v3  ;;  %746 = vmatprep.mubr.f32.mxu0 %v20_v9  ;;  %v886_v12 = vpack.c.bf16 %v59_v11, %v58_v10  ;;  %v60_v13 = vld [vmem:[%s1330_s1 + $0x40] sm:$0xff]  ;;  %v61_v14 = vld [vmem:[%s1330_s1 + $0x48] sm:$0xff]  ;;  %v62_v16 = vld [vmem:[%s1330_s1 + $0x50] sm:$0xff] }
   0x5   :  { %877 = vmatpush3.bf16.msra.mxu0 %v874_v3  ;;  %v890_v15 = vpack.c.bf16 %v61_v14, %v60_v13  ;;  %v63_v17 = vld [vmem:[%s1330_s1 + $0x58] sm:$0xff]  ;;  %v332_v18 = vld [vmem:[%s1332_s3] sm:$0xff]  ;;  %v333_v19 = vld [vmem:[%s1332_s3 + $0x8] sm:$0xff] }
   0x6   :  { %879 = vmatprep.subr.bf16.mxu0 %v878_v5  ;;  %v334_v20 = vld [vmem:[%s1332_s3 + $0x10] sm:$0xff]  ;;  %v894_v21 = vpack.c.bf16 %v63_v17, %v62_v16  ;;  %v64_v22 = vld [vmem:[%s1330_s1 + $0x60] sm:$0xff]  ;;  %v906_v23 = vpack.c.bf16 %v333_v19, %v332_v18  ;;  %v335_v24 = vld [vmem:[%s1332_s3 + $0x18] sm:$0xff] }
   0x7   :  { %v65_v25 = vld [vmem:[%s1330_s1 + $0x68] sm:$0xff]  ;;  %v910_v26 = vpack.c.bf16 %v335_v24, %v334_v20  ;;  %v336_v27 = vld [vmem:[%s1332_s3 + $0x20] sm:$0xff]  ;;  %v66_v30 = vld [vmem:[%s1330_s1 + $0x70] sm:$0xff] }
   0x8   :  { %v337_v28 = vld [vmem:[%s1332_s3 + $0x28] sm:$0xff]  ;;  %907 = vmatprep.subr.bf16.mxu1 %v906_v23  ;;  %v898_v29 = vpack.c.bf16 %v65_v25, %v64_v22  ;;  %v67_v32 = vld [vmem:[%s1330_s1 + $0x78] sm:$0xff]  ;;  %v338_v33 = vld [vmem:[%s1332_s3 + $0x30] sm:$0xff] }
   0x9   :  { %881 = vmatpush3.bf16.msra.mxu0 %v878_v5  ;;  %909 = vmatpush3.bf16.msra.mxu1 %v906_v23  ;;  %v914_v31 = vpack.c.bf16 %v337_v28, %v336_v27  ;;  %v339_v34 = vld [vmem:[%s1332_s3 + $0x38] sm:$0xff]  ;;  %v902_v35 = vpack.c.bf16 %v67_v32, %v66_v30  ;;  %v340_v37 = vld [vmem:[%s1332_s3 + $0x40] sm:$0xff]  ;;  %v341_v38 = vld [vmem:[%s1332_s3 + $0x48] sm:$0xff] }
   0xa   :  { %883 = vmatprep.subr.bf16.mxu0 %v882_v8  ;;  %911 = vmatprep.subr.bf16.mxu1 %v910_v26  ;;  %v918_v36 = vpack.c.bf16 %v339_v34, %v338_v33  ;;  %v922_v39 = vpack.c.bf16 %v341_v38, %v340_v37  ;;  %v342_v40 = vld [vmem:[%s1332_s3 + $0x50] sm:$0xff]  ;;  %v343_v41 = vld [vmem:[%s1332_s3 + $0x58] sm:$0xff]  ;;  %v21_v42 = vld [vmem:[%s1331_s0 + $0x8] sm:$0xff] }
   0xb   :  { %v22_v43 = vld [vmem:[%s1331_s0 + $0x10] sm:$0xff]  ;;  %v926_v44 = vpack.c.bf16 %v343_v41, %v342_v40  ;;  %v344_v45 = vld [vmem:[%s1332_s3 + $0x60] sm:$0xff]  ;;  %v345_v46 = vld [vmem:[%s1332_s3 + $0x68] sm:$0xff] }
   0xc   :  { %v23_v47 = vld [vmem:[%s1331_s0 + $0x18] sm:$0xff]  ;;  %v24_v48 = vld [vmem:[%s1331_s0 + $0x20] sm:$0xff]  ;;  %v930_v49 = vpack.c.bf16 %v345_v46, %v344_v45  ;;  %v25_v50 = vld [vmem:[%s1331_s0 + $0x28] sm:$0xff] }
   0xd   :  { %885 = vmatpush3.bf16.msra.mxu0 %v882_v8  ;;  %913 = vmatpush3.bf16.msra.mxu1 %v910_v26  ;;  %v26_v51 = vld [vmem:[%s1331_s0 + $0x30] sm:$0xff]  ;;  %v27_v52 = vld [vmem:[%s1331_s0 + $0x38] sm:$0xff]  ;;  %v28_v53 = vld [vmem:[%s1331_s0 + $0x40] sm:$0xff] }
   0xe   :  { %887 = vmatprep.subr.bf16.mxu0 %v886_v12  ;;  %915 = vmatprep.subr.bf16.mxu1 %v914_v31  ;;  %v29_v54 = vld [vmem:[%s1331_s0 + $0x48] sm:$0xff]  ;;  %v30_v55 = vld [vmem:[%s1331_s0 + $0x50] sm:$0xff]  ;;  %v31_v56 = vld [vmem:[%s1331_s0 + $0x58] sm:$0xff] }
   0xf   :  { %v32_v57 = vld [vmem:[%s1331_s0 + $0x60] sm:$0xff]  ;;  %v33_v58 = vld [vmem:[%s1331_s0 + $0x68] sm:$0xff]  ;;  %v34_v59 = vld [vmem:[%s1331_s0 + $0x70] sm:$0xff] }
  0x10   :  { %v35_v60 = vld [vmem:[%s1331_s0 + $0x78] sm:$0xff]  ;;  %v36_v61 = vld [vmem:[%s1331_s0 + $0x80] sm:$0xff]  ;;  %v37_v62 = vld [vmem:[%s1331_s0 + $0x88] sm:$0xff] }
  0x11   :  { %889 = vmatpush3.bf16.msra.mxu0 %v886_v12  ;;  %917 = vmatpush3.bf16.msra.mxu1 %v914_v31  ;;  %v38_v63 = vld [vmem:[%s1331_s0 + $0x90] sm:$0xff]  ;;  %v39_v0 = vld [vmem:[%s1331_s0 + $0x98] sm:$0xff]  ;;  %v40_v1 = vld [vmem:[%s1331_s0 + $0xa0] sm:$0xff] }
  0x12   :  { %891 = vmatprep.subr.bf16.mxu0 %v890_v15  ;;  %919 = vmatprep.subr.bf16.mxu1 %v918_v36  ;;  %v41_v2 = vld [vmem:[%s1331_s0 + $0xa8] sm:$0xff]  ;;  %v42_v3 = vld [vmem:[%s1331_s0 + $0xb0] sm:$0xff]  ;;  %v43_v4 = vld [vmem:[%s1331_s0 + $0xb8] sm:$0xff] }
  0x13   :  { %v44_v5 = vld [vmem:[%s1331_s0 + $0xc0] sm:$0xff]  ;;  %v45_v6 = vld [vmem:[%s1331_s0 + $0xc8] sm:$0xff]  ;;  %v46_v7 = vld [vmem:[%s1331_s0 + $0xd0] sm:$0xff] }
  0x14   :  { %v47_v8 = vld [vmem:[%s1331_s0 + $0xd8] sm:$0xff]  ;;  %v48_v9 = vld [vmem:[%s1331_s0 + $0xe0] sm:$0xff]  ;;  %v49_v10 = vld [vmem:[%s1331_s0 + $0xe8] sm:$0xff] }
  0x15   :  { %893 = vmatpush3.bf16.msra.mxu0 %v890_v15  ;;  %921 = vmatpush3.bf16.msra.mxu1 %v918_v36  ;;  %v50_v11 = vld [vmem:[%s1331_s0 + $0xf0] sm:$0xff]  ;;  %v51_v12 = vld [vmem:[%s1331_s0 + $0xf8] sm:$0xff]  ;;  %v1163_v16 = vld [vmem:[%s1333_s2] ss:$0 sm:$0xff] }
  0x16   :  { %895 = vmatprep.subr.bf16.mxu0 %v894_v21  ;;  %923 = vmatprep.subr.bf16.mxu1 %v922_v39  ;;  %v346_v13 = vld [vmem:[%s1332_s3 + $0x70] sm:$0xff]  ;;  %v347_v14 = vld [vmem:[%s1332_s3 + $0x78] sm:$0xff] }
  0x17   :  { %v934_v15 = vpack.c.bf16 %v347_v14, %v346_v13 }
  0x19   :  { %897 = vmatpush3.bf16.msra.mxu0 %v894_v21  ;;  %925 = vmatpush3.bf16.msra.mxu1 %v922_v39 }
  0x1a   :  { %899 = vmatprep.subr.bf16.mxu0 %v898_v29  ;;  %927 = vmatprep.subr.bf16.mxu1 %v926_v44 }
  0x1d   :  { %901 = vmatpush3.bf16.msra.mxu0 %v898_v29  ;;  %929 = vmatpush3.bf16.msra.mxu1 %v926_v44 }
  0x1e   :  { %903 = vmatprep.subr.bf16.mxu0 %v902_v35  ;;  %931 = vmatprep.subr.bf16.mxu1 %v930_v49 }
  0x21   :  { %905 = vmatpush3.bf16.msra.mxu0 %v902_v35  ;;  %933 = vmatpush3.bf16.msra.mxu1 %v930_v49 }
  0x22   :  { %935 = vmatprep.subr.bf16.mxu1 %v934_v15 }
  0x24   :  { %747 = vmatmul.mubr.f32.vlgmr.msra.gmra.mrb[0].mxu0 %v21_v42 }
  0x25   :  { %749 = vmatprep.mubr.f32.mxu0 %v22_v43  ;;  %937 = vmatpush3.bf16.msra.mxu1 %v934_v15 }
  0x28   :  { %750 = vmatmul.mubr.f32.gmra.mrb[2].mxu0 %v23_v47 }
  0x29   :  { %752 = vmatprep.mubr.f32.mxu0 %v24_v48 }
  0x2c   :  { %753 = vmatmul.mubr.f32.gmra.mrb[4].mxu0 %v25_v50 }
  0x2d   :  { %755 = vmatprep.mubr.f32.mxu0 %v26_v51 }
  0x30   :  { %756 = vmatmul.mubr.f32.gmra.mrb[6].mxu0 %v27_v52 }
  0x31   :  { %758 = vmatprep.mubr.f32.mxu0 %v28_v53 }
  0x34   :  { %759 = vmatmul.mubr.f32.gmra.mrb[8].mxu0 %v29_v54 }
  0x35   :  { %761 = vmatprep.mubr.f32.mxu0 %v30_v55 }
  0x38   :  { %762 = vmatmul.mubr.f32.gmra.mrb[10].mxu0 %v31_v56 }
  0x39   :  { %764 = vmatprep.mubr.f32.mxu0 %v32_v57 }
  0x3c   :  { %765 = vmatmul.mubr.f32.gmra.mrb[12].mxu0 %v33_v58 }
  0x3d   :  { %767 = vmatprep.mubr.f32.mxu0 %v34_v59 }
  0x40   :  { %768 = vmatmul.mubr.f32.gmra.mrb[14].mxu0 %v35_v60 }
  0x41   :  { %770 = vmatprep.mubr.f32.mxu0 %v36_v61 }
  0x44   :  { %771 = vmatmul.mubr.f32.gmra.mrb[16].mxu0 %v37_v62 }
  0x45   :  { %773 = vmatprep.mubr.f32.mxu0 %v38_v63 }
  0x48   :  { %774 = vmatmul.mubr.f32.gmra.mrb[18].mxu0 %v39_v0 }
  0x49   :  { %776 = vmatprep.mubr.f32.mxu0 %v40_v1 }
  0x4c   :  { %777 = vmatmul.mubr.f32.gmra.mrb[20].mxu0 %v41_v2 }
  0x4d   :  { %779 = vmatprep.mubr.f32.mxu0 %v42_v3 }
  0x50   :  { %780 = vmatmul.mubr.f32.gmra.mrb[22].mxu0 %v43_v4 }
  0x51   :  { %782 = vmatprep.mubr.f32.mxu0 %v44_v5 }
  0x54   :  { %783 = vmatmul.mubr.f32.gmra.mrb[24].mxu0 %v45_v6 }
  0x55   :  { %785 = vmatprep.mubr.f32.mxu0 %v46_v7 }
  0x58   :  { %786 = vmatmul.mubr.f32.gmra.mrb[26].mxu0 %v47_v8 }
  0x59   :  { %788 = vmatprep.mubr.f32.mxu0 %v48_v9 }
  0x5c   :  { %789 = vmatmul.mubr.f32.gmra.mrb[28].mxu0 %v49_v10 }
  0x5d   :  { %791 = vmatprep.mubr.f32.mxu0 %v50_v11 }
  0x60   :  { %792 = vmatmul.mubr.f32.gmra.mrb[30].mxu0 %v51_v12 }
  0xf7   :  { %v748_v17 = vpop.f32.mrb[0].mxu0 }
  0xf8   :  { %v147_v18 = vadd.f32 %v748_v17, %v1163_v16  ;;  %v141_v19 = vpop.f32.mrb[1].mxu0 }
  0xf9   :  { %v142_v20 = vadd.f32 %v1163_v16, %v141_v19 }
  0xfa   :  { %v301_v23 = vmax.f32 %v147_v18, 0.0 }
  0xfb   :  { %v751_v21 = vpop.f32.mrb[2].mxu0  ;;  %v300_v22 = vmax.f32 %v142_v20, 0.0 }
  0xfc   :  { %v157_v24 = vadd.f32 %v751_v21, %v1163_v16  ;;  %v151_v25 = vpop.f32.mrb[3].mxu0 }
  0xfd   :  { %v152_v26 = vadd.f32 %v1163_v16, %v151_v25  ;;  %826 = vmatprep.mubr.f32.mxu1 %v300_v22 }
  0xfe   :  { %827 = vmatmul.mubr.f32.vlgmr.msra.gmra.mrb[0].mxu1 %v301_v23  ;;  %v303_v29 = vmax.f32 %v157_v24, 0.0 }
  0xff   :  { %v302_v27 = vmax.f32 %v152_v26, 0.0  ;;  %v754_v28 = vpop.f32.mrb[4].mxu0 }
 0x100   :  { %v167_v30 = vadd.f32 %v754_v28, %v1163_v16  ;;  %v161_v31 = vpop.f32.mrb[5].mxu0 }
 0x101   :  { %v162_v32 = vadd.f32 %v1163_v16, %v161_v31  ;;  %829 = vmatprep.mubr.f32.mxu1 %v302_v27 }
 0x102   :  { %830 = vmatmul.mubr.f32.gmra.mrb[2].mxu1 %v303_v29  ;;  %v305_v35 = vmax.f32 %v167_v30, 0.0 }
 0x103   :  { %v304_v33 = vmax.f32 %v162_v32, 0.0  ;;  %v757_v34 = vpop.f32.mrb[6].mxu0 }
 0x104   :  { %v177_v36 = vadd.f32 %v757_v34, %v1163_v16  ;;  %v171_v37 = vpop.f32.mrb[7].mxu0 }
 0x105   :  { %v172_v38 = vadd.f32 %v1163_v16, %v171_v37  ;;  %832 = vmatprep.mubr.f32.mxu1 %v304_v33 }
 0x106   :  { %833 = vmatmul.mubr.f32.gmra.mrb[4].mxu1 %v305_v35  ;;  %v307_v41 = vmax.f32 %v177_v36, 0.0 }
 0x107   :  { %v306_v39 = vmax.f32 %v172_v38, 0.0  ;;  %v760_v40 = vpop.f32.mrb[8].mxu0 }
 0x108   :  { %v187_v42 = vadd.f32 %v760_v40, %v1163_v16  ;;  %v181_v43 = vpop.f32.mrb[9].mxu0 }
 0x109   :  { %v182_v44 = vadd.f32 %v1163_v16, %v181_v43  ;;  %835 = vmatprep.mubr.f32.mxu1 %v306_v39 }
 0x10a   :  { %836 = vmatmul.mubr.f32.gmra.mrb[6].mxu1 %v307_v41  ;;  %v309_v47 = vmax.f32 %v187_v42, 0.0 }
 0x10b   :  { %v308_v45 = vmax.f32 %v182_v44, 0.0  ;;  %v763_v46 = vpop.f32.mrb[10].mxu0 }
 0x10c   :  { %v197_v48 = vadd.f32 %v763_v46, %v1163_v16  ;;  %v191_v49 = vpop.f32.mrb[11].mxu0 }
 0x10d   :  { %v192_v50 = vadd.f32 %v1163_v16, %v191_v49  ;;  %838 = vmatprep.mubr.f32.mxu1 %v308_v45 }
 0x10e   :  { %839 = vmatmul.mubr.f32.gmra.mrb[8].mxu1 %v309_v47  ;;  %v311_v53 = vmax.f32 %v197_v48, 0.0 }
 0x10f   :  { %v310_v51 = vmax.f32 %v192_v50, 0.0  ;;  %v766_v52 = vpop.f32.mrb[12].mxu0  ;;  %v1200_v50 = vld [vmem:[%s1334_s4] ss:$0 sm:$0xff] }
 0x110   :  { %v207_v54 = vadd.f32 %v766_v52, %v1163_v16  ;;  %v201_v55 = vpop.f32.mrb[13].mxu0 }
 0x111   :  { %v202_v56 = vadd.f32 %v1163_v16, %v201_v55  ;;  %841 = vmatprep.mubr.f32.mxu1 %v310_v51 }
 0x112   :  { %842 = vmatmul.mubr.f32.gmra.mrb[10].mxu1 %v311_v53  ;;  %v313_v59 = vmax.f32 %v207_v54, 0.0 }
 0x113   :  { %v312_v57 = vmax.f32 %v202_v56, 0.0  ;;  %v769_v58 = vpop.f32.mrb[14].mxu0 }
 0x114   :  { %v217_v60 = vadd.f32 %v769_v58, %v1163_v16  ;;  %v211_v61 = vpop.f32.mrb[15].mxu0 }
 0x115   :  { %v212_v62 = vadd.f32 %v1163_v16, %v211_v61  ;;  %844 = vmatprep.mubr.f32.mxu1 %v312_v57 }
 0x116   :  { %845 = vmatmul.mubr.f32.gmra.mrb[12].mxu1 %v313_v59  ;;  %v315_v1 = vmax.f32 %v217_v60, 0.0 }
 0x117   :  { %v314_v63 = vmax.f32 %v212_v62, 0.0  ;;  %v772_v0 = vpop.f32.mrb[16].mxu0 }
 0x118   :  { %v227_v2 = vadd.f32 %v772_v0, %v1163_v16  ;;  %v221_v3 = vpop.f32.mrb[17].mxu0 }
 0x119   :  { %v222_v4 = vadd.f32 %v1163_v16, %v221_v3  ;;  %847 = vmatprep.mubr.f32.mxu1 %v314_v63 }
 0x11a   :  { %848 = vmatmul.mubr.f32.gmra.mrb[14].mxu1 %v315_v1  ;;  %v317_v7 = vmax.f32 %v227_v2, 0.0 }
 0x11b   :  { %v316_v5 = vmax.f32 %v222_v4, 0.0  ;;  %v775_v6 = vpop.f32.mrb[18].mxu0 }
 0x11c   :  { %v237_v8 = vadd.f32 %v775_v6, %v1163_v16  ;;  %v231_v9 = vpop.f32.mrb[19].mxu0 }
 0x11d   :  { %v232_v10 = vadd.f32 %v1163_v16, %v231_v9  ;;  %850 = vmatprep.mubr.f32.mxu1 %v316_v5 }
 0x11e   :  { %851 = vmatmul.mubr.f32.gmra.mrb[16].mxu1 %v317_v7  ;;  %v319_v13 = vmax.f32 %v237_v8, 0.0 }
 0x11f   :  { %v318_v11 = vmax.f32 %v232_v10, 0.0  ;;  %v778_v12 = vpop.f32.mrb[20].mxu0 }
 0x120   :  { %v247_v14 = vadd.f32 %v778_v12, %v1163_v16  ;;  %v241_v15 = vpop.f32.mrb[21].mxu0 }
 0x121   :  { %v242_v17 = vadd.f32 %v1163_v16, %v241_v15  ;;  %853 = vmatprep.mubr.f32.mxu1 %v318_v11 }
 0x122   :  { %854 = vmatmul.mubr.f32.gmra.mrb[18].mxu1 %v319_v13  ;;  %v321_v20 = vmax.f32 %v247_v14, 0.0 }
 0x123   :  { %v320_v18 = vmax.f32 %v242_v17, 0.0  ;;  %v781_v19 = vpop.f32.mrb[22].mxu0 }
 0x124   :  { %v257_v21 = vadd.f32 %v781_v19, %v1163_v16  ;;  %v251_v22 = vpop.f32.mrb[23].mxu0 }
 0x125   :  { %v252_v23 = vadd.f32 %v1163_v16, %v251_v22  ;;  %856 = vmatprep.mubr.f32.mxu1 %v320_v18 }
 0x126   :  { %857 = vmatmul.mubr.f32.gmra.mrb[20].mxu1 %v321_v20  ;;  %v323_v26 = vmax.f32 %v257_v21, 0.0 }
 0x127   :  { %v322_v24 = vmax.f32 %v252_v23, 0.0  ;;  %v784_v25 = vpop.f32.mrb[24].mxu0 }
 0x128   :  { %v267_v27 = vadd.f32 %v784_v25, %v1163_v16  ;;  %v261_v28 = vpop.f32.mrb[25].mxu0 }
 0x129   :  { %v262_v29 = vadd.f32 %v1163_v16, %v261_v28  ;;  %859 = vmatprep.mubr.f32.mxu1 %v322_v24 }
 0x12a   :  { %860 = vmatmul.mubr.f32.gmra.mrb[22].mxu1 %v323_v26  ;;  %v325_v32 = vmax.f32 %v267_v27, 0.0 }
 0x12b   :  { %v324_v30 = vmax.f32 %v262_v29, 0.0  ;;  %v787_v31 = vpop.f32.mrb[26].mxu0 }
 0x12c   :  { %v277_v33 = vadd.f32 %v787_v31, %v1163_v16  ;;  %v271_v34 = vpop.f32.mrb[27].mxu0 }
 0x12d   :  { %v272_v35 = vadd.f32 %v1163_v16, %v271_v34  ;;  %862 = vmatprep.mubr.f32.mxu1 %v324_v30 }
 0x12e   :  { %863 = vmatmul.mubr.f32.gmra.mrb[24].mxu1 %v325_v32  ;;  %v327_v38 = vmax.f32 %v277_v33, 0.0 }
 0x12f   :  { %v326_v36 = vmax.f32 %v272_v35, 0.0  ;;  %v790_v37 = vpop.f32.mrb[28].mxu0 }
 0x130   :  { %v287_v39 = vadd.f32 %v790_v37, %v1163_v16  ;;  %v281_v40 = vpop.f32.mrb[29].mxu0 }
 0x131   :  { %v282_v41 = vadd.f32 %v1163_v16, %v281_v40  ;;  %865 = vmatprep.mubr.f32.mxu1 %v326_v36 }
 0x132   :  { %866 = vmatmul.mubr.f32.gmra.mrb[26].mxu1 %v327_v38  ;;  %v329_v44 = vmax.f32 %v287_v39, 0.0 }
 0x133   :  { %v328_v42 = vmax.f32 %v282_v41, 0.0  ;;  %v793_v43 = vpop.f32.mrb[30].mxu0 }
 0x134   :  { %v297_v45 = vadd.f32 %v793_v43, %v1163_v16  ;;  %v291_v46 = vpop.f32.mrb[31].mxu0 }
 0x135   :  { %v292_v47 = vadd.f32 %v1163_v16, %v291_v46  ;;  %868 = vmatprep.mubr.f32.mxu1 %v328_v42 }
 0x136   :  { %869 = vmatmul.mubr.f32.gmra.mrb[28].mxu1 %v329_v44  ;;  %v331_v49 = vmax.f32 %v297_v45, 0.0 }
 0x137   :  { %v330_v48 = vmax.f32 %v292_v47, 0.0 }
 0x139   :  { %871 = vmatprep.mubr.f32.mxu1 %v330_v48 }
 0x13a   :  { %872 = vmatmul.mubr.f32.gmra.mrb[30].mxu1 %v331_v49 }
 0x1d1   :  { %v828_v51 = vpop.f32.mrb[0].mxu1 }
 0x1d2   :  { %v427_v52 = vadd.f32 %v828_v51, %v1200_v50  ;;  %v421_v53 = vpop.f32.mrb[1].mxu1 }
 0x1d3   :  { %v422_v54 = vadd.f32 %v1200_v50, %v421_v53 }
 0x1d4   :  { %581 = vst [vmem:[%s1335_s5 + $0x8] sm:$0xff] %v427_v52 }
 0x1d5   :  { %580 = vst [vmem:[%s1335_s5] sm:$0xff] %v422_v54  ;;  %v831_v16 = vpop.f32.mrb[2].mxu1 }
 0x1d6   :  { %v437_v55 = vadd.f32 %v831_v16, %v1200_v50  ;;  %v431_v56 = vpop.f32.mrb[3].mxu1 }
 0x1d7   :  { %v432_v57 = vadd.f32 %v1200_v50, %v431_v56 }
 0x1d8   :  { %583 = vst [vmem:[%s1335_s5 + $0x18] sm:$0xff] %v437_v55 }
 0x1d9   :  { %582 = vst [vmem:[%s1335_s5 + $0x10] sm:$0xff] %v432_v57  ;;  %v834_v58 = vpop.f32.mrb[4].mxu1 }
 0x1da   :  { %v447_v59 = vadd.f32 %v834_v58, %v1200_v50  ;;  %v441_v60 = vpop.f32.mrb[5].mxu1 }
 0x1db   :  { %v442_v61 = vadd.f32 %v1200_v50, %v441_v60 }
 0x1dc   :  { %585 = vst [vmem:[%s1335_s5 + $0x28] sm:$0xff] %v447_v59 }
 0x1dd   :  { %584 = vst [vmem:[%s1335_s5 + $0x20] sm:$0xff] %v442_v61  ;;  %v837_v62 = vpop.f32.mrb[6].mxu1 }
 0x1de   :  { %v457_v63 = vadd.f32 %v837_v62, %v1200_v50  ;;  %v451_v0 = vpop.f32.mrb[7].mxu1 }
 0x1df   :  { %v452_v1 = vadd.f32 %v1200_v50, %v451_v0 }
 0x1e0   :  { %587 = vst [vmem:[%s1335_s5 + $0x38] sm:$0xff] %v457_v63 }
 0x1e1   :  { %586 = vst [vmem:[%s1335_s5 + $0x30] sm:$0xff] %v452_v1  ;;  %v840_v2 = vpop.f32.mrb[8].mxu1 }
 0x1e2   :  { %v467_v3 = vadd.f32 %v840_v2, %v1200_v50  ;;  %v461_v4 = vpop.f32.mrb[9].mxu1 }
 0x1e3   :  { %v462_v5 = vadd.f32 %v1200_v50, %v461_v4 }
 0x1e4   :  { %589 = vst [vmem:[%s1335_s5 + $0x48] sm:$0xff] %v467_v3 }
 0x1e5   :  { %588 = vst [vmem:[%s1335_s5 + $0x40] sm:$0xff] %v462_v5  ;;  %v843_v6 = vpop.f32.mrb[10].mxu1 }
 0x1e6   :  { %v477_v7 = vadd.f32 %v843_v6, %v1200_v50  ;;  %v471_v8 = vpop.f32.mrb[11].mxu1 }
 0x1e7   :  { %v472_v9 = vadd.f32 %v1200_v50, %v471_v8 }
 0x1e8   :  { %591 = vst [vmem:[%s1335_s5 + $0x58] sm:$0xff] %v477_v7 }
 0x1e9   :  { %590 = vst [vmem:[%s1335_s5 + $0x50] sm:$0xff] %v472_v9  ;;  %v846_v10 = vpop.f32.mrb[12].mxu1 }
 0x1ea   :  { %v487_v11 = vadd.f32 %v846_v10, %v1200_v50  ;;  %v481_v12 = vpop.f32.mrb[13].mxu1 }
 0x1eb   :  { %v482_v13 = vadd.f32 %v1200_v50, %v481_v12 }
 0x1ec   :  { %593 = vst [vmem:[%s1335_s5 + $0x68] sm:$0xff] %v487_v11 }
 0x1ed   :  { %592 = vst [vmem:[%s1335_s5 + $0x60] sm:$0xff] %v482_v13  ;;  %v849_v14 = vpop.f32.mrb[14].mxu1 }
 0x1ee   :  { %v497_v15 = vadd.f32 %v849_v14, %v1200_v50  ;;  %v491_v17 = vpop.f32.mrb[15].mxu1 }
 0x1ef   :  { %v492_v18 = vadd.f32 %v1200_v50, %v491_v17 }
 0x1f0   :  { %595 = vst [vmem:[%s1335_s5 + $0x78] sm:$0xff] %v497_v15 }
 0x1f1   :  { %594 = vst [vmem:[%s1335_s5 + $0x70] sm:$0xff] %v492_v18  ;;  %v852_v19 = vpop.f32.mrb[16].mxu1 }
 0x1f2   :  { %v507_v20 = vadd.f32 %v852_v19, %v1200_v50  ;;  %v501_v21 = vpop.f32.mrb[17].mxu1 }
 0x1f3   :  { %v502_v22 = vadd.f32 %v1200_v50, %v501_v21 }
 0x1f4   :  { %597 = vst [vmem:[%s1335_s5 + $0x88] sm:$0xff] %v507_v20 }
 0x1f5   :  { %596 = vst [vmem:[%s1335_s5 + $0x80] sm:$0xff] %v502_v22  ;;  %v855_v23 = vpop.f32.mrb[18].mxu1 }
 0x1f6   :  { %v517_v24 = vadd.f32 %v855_v23, %v1200_v50  ;;  %v511_v25 = vpop.f32.mrb[19].mxu1 }
 0x1f7   :  { %v512_v26 = vadd.f32 %v1200_v50, %v511_v25 }
 0x1f8   :  { %599 = vst [vmem:[%s1335_s5 + $0x98] sm:$0xff] %v517_v24 }
 0x1f9   :  { %598 = vst [vmem:[%s1335_s5 + $0x90] sm:$0xff] %v512_v26  ;;  %v858_v27 = vpop.f32.mrb[20].mxu1 }
 0x1fa   :  { %v527_v28 = vadd.f32 %v858_v27, %v1200_v50  ;;  %v521_v29 = vpop.f32.mrb[21].mxu1 }
 0x1fb   :  { %v522_v30 = vadd.f32 %v1200_v50, %v521_v29 }
 0x1fc   :  { %601 = vst [vmem:[%s1335_s5 + $0xa8] sm:$0xff] %v527_v28 }
 0x1fd   :  { %600 = vst [vmem:[%s1335_s5 + $0xa0] sm:$0xff] %v522_v30  ;;  %v861_v31 = vpop.f32.mrb[22].mxu1 }
 0x1fe   :  { %v537_v32 = vadd.f32 %v861_v31, %v1200_v50  ;;  %v531_v33 = vpop.f32.mrb[23].mxu1 }
 0x1ff   :  { %v532_v34 = vadd.f32 %v1200_v50, %v531_v33 }
 0x200   :  { %603 = vst [vmem:[%s1335_s5 + $0xb8] sm:$0xff] %v537_v32 }
 0x201   :  { %602 = vst [vmem:[%s1335_s5 + $0xb0] sm:$0xff] %v532_v34  ;;  %v864_v35 = vpop.f32.mrb[24].mxu1 }
 0x202   :  { %v547_v36 = vadd.f32 %v864_v35, %v1200_v50  ;;  %v541_v37 = vpop.f32.mrb[25].mxu1 }
 0x203   :  { %v542_v38 = vadd.f32 %v1200_v50, %v541_v37 }
 0x204   :  { %605 = vst [vmem:[%s1335_s5 + $0xc8] sm:$0xff] %v547_v36 }
 0x205   :  { %604 = vst [vmem:[%s1335_s5 + $0xc0] sm:$0xff] %v542_v38  ;;  %v867_v39 = vpop.f32.mrb[26].mxu1 }
 0x206   :  { %v557_v40 = vadd.f32 %v867_v39, %v1200_v50  ;;  %v551_v41 = vpop.f32.mrb[27].mxu1 }
 0x207   :  { %v552_v42 = vadd.f32 %v1200_v50, %v551_v41 }
 0x208   :  { %607 = vst [vmem:[%s1335_s5 + $0xd8] sm:$0xff] %v557_v40 }
 0x209   :  { %606 = vst [vmem:[%s1335_s5 + $0xd0] sm:$0xff] %v552_v42  ;;  %v870_v43 = vpop.f32.mrb[28].mxu1 }
 0x20a   :  { %v567_v44 = vadd.f32 %v870_v43, %v1200_v50  ;;  %v561_v45 = vpop.f32.mrb[29].mxu1 }
 0x20b   :  { %v562_v46 = vadd.f32 %v1200_v50, %v561_v45 }
 0x20c   :  { %609 = vst [vmem:[%s1335_s5 + $0xe8] sm:$0xff] %v567_v44 }
 0x20d   :  { %608 = vst [vmem:[%s1335_s5 + $0xe0] sm:$0xff] %v562_v46  ;;  %v873_v47 = vpop.f32.mrb[30].mxu1 }
 0x20e   :  { %v577_v48 = vadd.f32 %v873_v47, %v1200_v50  ;;  %v571_v49 = vpop.f32.mrb[31].mxu1 }
 0x20f   :  { %v572_v51 = vadd.f32 %v1200_v50, %v571_v49 }
 0x210   :  { %611 = vst [vmem:[%s1335_s5 + $0xf8] sm:$0xff] %v577_v48 }
 0x211   :  { %610 = vst [vmem:[%s1335_s5 + $0xf0] sm:$0xff] %v572_v51 }

</bundles_post_ra>
